<compile_context>
chip_gen: v5e
topology: v5e:2x2
jax: 0.10.0
libtpu: 0.0.40
codegen_flags: <defaults>
</compile_context>

<pallas_src>
import math

import jax
import jax.numpy as jnp
from jax.experimental import pallas as pl
from jax.experimental.pallas import tpu as pltpu


def _scaled_tanh_kernel(params_ref, x_ref, o_ref):
    # params_ref: (2, td)  row 0 = shift, row 1 = scale
    # x_ref/o_ref: (tb, td)
    # Elementwise hot path: tanh on EUP, mul/add on VPU; (1, td) broadcasts
    # over the batch (sublane) axis for free.
    shift = params_ref[0:1, :]
    scale = params_ref[1:2, :]
    o_ref[...] = shift + scale * jnp.tanh(x_ref[...])


def scaled_tanh(x, low, high, *, target_tile_bytes=4 << 20):
    """shift + scale * tanh(x) with per-feature scale/shift.

    x:    (B, D) float array (f32 or bf16)
    low:  (D,)   lower bound per feature
    high: (D,)   upper bound per feature
    """
    B, D = x.shape
    dtype = x.dtype
    itemsize = jnp.dtype(dtype).itemsize

    # Compute scale/shift in f32 for precision, cast once to the compute dtype.
    low32 = jnp.asarray(low, jnp.float32)
    high32 = jnp.asarray(high, jnp.float32)
    scale32 = (high32 - low32) * 0.5
    shift32 = scale32 + low32

    # ---- layout canonicalization: make the lane (last) axis lane-dense -----
    # Fold `fold` consecutive batch rows into one row so the last dim becomes
    # a multiple of 128 (ideally >= 512 lanes). Pure view: reshape only.
    fold = 1
    if D % 128 != 0:
        k0 = 128 // math.gcd(D, 128)
        if B % k0 == 0:
            fold = k0
            while fold * D < 512 and B % (fold * 2) == 0:
                fold *= 2
        # else: fall back to full-D blocks (masked stores, still correct).
        # TODO(synk): could pad D to a multiple of 128 instead for ragged D
        # with awkward batch sizes; kept as full-D blocks to avoid extra copies.

    if fold > 1:
        xw = x.reshape(B // fold, fold * D)
        shift_w = jnp.tile(shift32, fold)
        scale_w = jnp.tile(scale32, fold)
    else:
        xw = x
        shift_w, scale_w = shift32, scale32

    Bw, Dw = xw.shape
    params = jnp.stack([shift_w, scale_w]).astype(dtype)  # (2, Dw)

    # ---- tile selection (VMEM-budget aware) --------------------------------
    # Feature tile: multiple of 128 (or full Dw), capped at 2048 lanes.
    if Dw % 128 == 0:
        td = min(Dw, 2048)
    else:
        td = Dw  # full-dim block is always legal
    # Batch tile: ~target_tile_bytes of x per tile. Total buffering is roughly
    # 2 x-bufs + 2 out-bufs = 4 * tb*td*itemsize, kept well under 24 MiB.
    tb = max(1, target_tile_bytes // (td * itemsize))
    if tb >= Bw:
        tb = Bw  # full-dim block is legal even if not a multiple of 8
    else:
        tb = max(8, (tb // 8) * 8)  # keep sublane-aligned tiles

    grid = (pl.cdiv(Bw, tb), pl.cdiv(Dw, td))

    out = pl.pallas_call(
        _scaled_tanh_kernel,
        out_shape=jax.ShapeDtypeStruct((Bw, Dw), dtype),
        grid_spec=pltpu.PrefetchScalarGridSpec(
            num_scalar_prefetch=0,
            grid=grid,
            in_specs=[
                # merged shift/scale: one tiny resident block per feature stripe
                pl.BlockSpec((2, td), lambda i, j: (0, j)),
                # x: tile over batch and features
                pl.BlockSpec((tb, td), lambda i, j: (i, j)),
            ],
            out_specs=pl.BlockSpec((tb, td), lambda i, j: (i, j)),
        ),
        compiler_params=pltpu.CompilerParams(
            dimension_semantics=("parallel", "parallel"),
            vmem_limit_bytes=48 << 20,
        ),
    )(params, xw)

    return out.reshape(B, D) if fold > 1 else out


def _reference(x, low, high):
    low32 = jnp.asarray(low, jnp.float32)
    high32 = jnp.asarray(high, jnp.float32)
    scale = (high32 - low32) / 2.0
    shift = scale + low32
    return (shift[None, :] + scale[None, :] * jnp.tanh(x.astype(jnp.float32))).astype(x.dtype)


if __name__ == "__main__":
    key = jax.random.PRNGKey(0)

    # Small shapes consistent with the module: batch=16, action dim=32.
    B, D = 16, 32
    low = -1.0 - 0.1 * jnp.arange(D, dtype=jnp.float32)
    high = 1.0 + 0.05 * jnp.arange(D, dtype=jnp.float32)
    x = jax.random.normal(key, (B, D), dtype=jnp.float32)

    out = jax.block_until_ready(scaled_tanh(x, low, high))
    ref = _reference(x, low, high)
    assert jnp.allclose(out, ref, atol=1e-5, rtol=1e-5), "mismatch vs reference (folded path)"

    # Also exercise the D % 128 == 0 (no-fold) path at a small size.
    B2, D2 = 8, 256
    low2 = -2.0 * jnp.ones((D2,), jnp.float32)
    high2 = 3.0 * jnp.ones((D2,), jnp.float32)
    x2 = jax.random.normal(jax.random.PRNGKey(1), (B2, D2), dtype=jnp.float32)
    out2 = jax.block_until_ready(scaled_tanh(x2, low2, high2))
    ref2 = _reference(x2, low2, high2)
    assert jnp.allclose(out2, ref2, atol=1e-5, rtol=1e-5), "mismatch vs reference (lane-dense path)"

    print("KERNEL_OK")
</pallas_src>

<mosaic_0001>
module attributes {stable_mosaic.version = 11 : i64} {
  func.func @_scaled_tanh_kernel(%arg0: i32, %arg1: i32, %arg2: memref<2x512xf32, #tpu.memory_space<vmem>>, %arg3: memref<1x512xf32, #tpu.memory_space<vmem>>, %arg4: memref<1x512xf32, #tpu.memory_space<vmem>>) attributes {dimension_semantics = [#tpu.dimension_semantics<parallel>, #tpu.dimension_semantics<parallel>], iteration_bounds = array<i64: 1, 1>, scalar_prefetch = 0 : i64, scratch_operands = 0 : i64, tpu.core_type = #tpu.core_type<tc>, window_params = [{transform_indices = @transform_0, window_bounds = array<i64: 2, 512>}, {transform_indices = @transform_1, window_bounds = array<i64: 1, 512>}, {transform_indices = @transform_2, window_bounds = array<i64: 1, 512>}]} {
    %c0 = arith.constant 0 : index
    %c0_0 = arith.constant 0 : index
    %0 = vector.load %arg2[%c0, %c0_0] : memref<2x512xf32, #tpu.memory_space<vmem>>, vector<1x512xf32>
    %c1 = arith.constant 1 : index
    %c0_1 = arith.constant 0 : index
    %1 = vector.load %arg2[%c1, %c0_1] : memref<2x512xf32, #tpu.memory_space<vmem>>, vector<1x512xf32>
    %c0_2 = arith.constant 0 : index
    %c0_3 = arith.constant 0 : index
    %2 = vector.load %arg3[%c0_2, %c0_3] : memref<1x512xf32, #tpu.memory_space<vmem>>, vector<1x512xf32>
    %3 = math.tanh %2 : vector<1x512xf32>
    %4 = arith.mulf %1, %3 : vector<1x512xf32>
    %5 = arith.addf %0, %4 : vector<1x512xf32>
    %c0_4 = arith.constant 0 : index
    %c0_5 = arith.constant 0 : index
    %6 = vector.load %arg4[%c0_4, %c0_5] : memref<1x512xf32, #tpu.memory_space<vmem>>, vector<1x512xf32>
    tpu.vector_store %arg4[%c0_4, %c0_5], %5 {strides = array<i32>} : memref<1x512xf32, #tpu.memory_space<vmem>>, vector<1x512xf32>,
    return
  }
  func.func @transform_0(%arg0: i32, %arg1: i32) -> (i32, i32) {
    %c0_i32 = arith.constant 0 : i32
    %c0_i32_0 = arith.constant 0 : i32
    return %c0_i32, %arg1 : i32, i32
  }
  func.func @transform_1(%arg0: i32, %arg1: i32) -> (i32, i32) {
    %c0_i32 = arith.constant 0 : i32
    return %arg0, %arg1 : i32, i32
  }
  func.func @transform_2(%arg0: i32, %arg1: i32) -> (i32, i32) {
    %c0_i32 = arith.constant 0 : i32
    return %arg0, %arg1 : i32, i32
  }
}

</mosaic_0001>

<bundles_post_ra>
// kernel: tpu_custom_call.1
= control target key start
LH: loop header
LB: loop body
LE: loop exit
PB: predicated region body
PF: predicated region fallthrough
CT: control target
= control target key end

     0   :  { %7 = vsyncpa [#allocation3], 0  ;;  %s180_s0 = inlined_call_operand.hbm [shape: f32[2,512], index: 0, kind: input, shape index: {}]   ;;  %s181_s1 = inlined_call_operand.hbm [shape: f32[1,512], index: 1, kind: input, shape index: {}]   ;;  %s182_s2 = inlined_call_operand.hbm [shape: f32[1,512], index: 2, kind: output, shape index: {}]  }
   0x1   :  { %8 = vsyncpa [#allocation6], 0 }
   0x2   :  { %9 = vsyncpa [#allocation4], 0  ;;  %s15_s11 = sshll.u32 %s180_s0, 4  ;;  %s153_s12 = smov [#allocation2]   ;;  %s16_s11 = int_to_ptr.hbm [resolvable:$true] %s15_s11 }
   0x3   :  { %s17_s13 = sshll.u32 %s153_s12, 4  ;;  %s26_s16 = sshll.u32 %s181_s1, 4  ;;  %s18_s13 = int_to_ptr.vmem [resolvable:$true] %s17_s13  ;;  %s27_s16 = int_to_ptr.hbm [resolvable:$true] %s26_s16 }
   0x4   :  { %20 = dma.hbm_to_vmem [thread:$0]  %s16_s11, 128, %s18_s13, [#allocation3]  }
   0x5   :  { %s154_s17 = smov [#allocation5]  }
   0x6   :  { %s28_s18 = sshll.u32 %s154_s17, 4  ;;  %s29_s18 = int_to_ptr.vmem [resolvable:$true] %s28_s18 }
   0x7   :  { %31 = dma.hbm_to_vmem [thread:$0]  %s27_s16, 64, %s29_s18, [#allocation6]  }
   0x8   :  { %147 = dma.done.wait [#allocation3], 128  }
   0x9   :  { %148 = vsyncadd [#allocation3], 4294967168 }
   0xa   :  { %149 = dma.done.wait [#allocation6], 64  }
   0xb   :  { %150 = vsyncadd [#allocation6], 4294967232  ;;  %v43_v0 = vld [vmem:[#allocation5] sm:$0xf]  ;;  %v47_v2 = vlaneseq  ;;  %s155_s0 = smov [#allocation7]   ;;  %s59_s21 = sshll.u32 %s182_s2, 4  ;;  %s60_s21 = int_to_ptr.hbm [resolvable:$true] %s59_s21 }
   0xc   :  { %73 = vtanh.f32 %v43_v0  ;;  %v42_v1 = vld [vmem:[#allocation2 + $0x1] ss:$2 sm:$0xf]  ;;  %v40_v4 = vld [vmem:[#allocation2] ss:$2 sm:$0xf] }
   0xd   :  { %s57_s19 = sshll.u32 %s155_s0, 4  ;;  %vm49_vm0 = vcmp.lt.s32.totalorder %v47_v2, 512  ;;  %s58_s19 = int_to_ptr.vmem [resolvable:$true] %s57_s19 }
  0x12   :  { %v74_v3 = vpop.eup %73 }
  0x13   :  { %v45_v5 = vmul.f32 %v74_v3, %v42_v1 }
  0x15   :  { %v46_v6 = vadd.f32 %v45_v5, %v40_v4 }
  0x17   :  { %51 = vst.msk [vmem:[#allocation7] sm:$0xf] %vm49_vm0, %v46_v6 }
  0x18   :  { %62 = dma.vmem_to_hbm [thread:$0]  %s58_s19, 64, %s60_s21, [#allocation4]  }
  0x19   :  { %151 = dma.done.wait [#allocation4], 64  }
  0x1a   :  { %152 = vsyncadd [#allocation4], 4294967232 }
  0x1b   :  { %67 = vsyncpa [#allocation3], 1 }
  0x1c   :  { %68 = vsyncpa [#allocation6], 1 }
  0x1d   :  { %69 = vsyncpa [#allocation4], 1 }

</bundles_post_ra>
